<compile_context>
chip_gen: v6e
topology: v6e:2x2x1
jax: 0.10.0
libtpu: 0.0.40
codegen_flags: <defaults>
</compile_context>

<pallas_src>
import jax
import jax.numpy as jnp
from jax.experimental import pallas as pl
from jax.experimental.pallas import tpu as pltpu


def _round_up(n, m):
    return ((n + m - 1) // m) * m


def mlp_kernel(x_ref, w1_ref, b1_ref, w2_ref, b2_ref, w3_ref, b3_ref, o_ref):
    # Cast x to the weight compute dtype (bf16) in-register; fc1 MXU matmul
    # accumulates in f32, bias add + ReLU run on the VPU in f32.
    x = x_ref[...].astype(w1_ref.dtype)
    h1 = jnp.dot(x, w1_ref[...], preferred_element_type=jnp.float32)
    h1 = jnp.maximum(h1 + b1_ref[...], 0.0)
    # fc2 + ReLU
    h2 = jnp.dot(h1.astype(w2_ref.dtype), w2_ref[...],
                 preferred_element_type=jnp.float32)
    h2 = jnp.maximum(h2 + b2_ref[...], 0.0)
    # fc3 (no activation); output padded only to 8 lanes, stored as f32.
    out = jnp.dot(h2.astype(w3_ref.dtype), w3_ref[...],
                  preferred_element_type=jnp.float32)
    o_ref[...] = (out + b3_ref[...]).astype(o_ref.dtype)


def prepare_params(params, compute_dtype=jnp.bfloat16):
    """One-time conversion of f32 [in, out] params to kernel-ready form.

    Returns ((w1c, b1, w2c, b2, w3c, b3p), out_dim) where weights are bf16,
    biases are f32, and the fc3 weight/bias are zero-padded to 8 output lanes.
    Call once and reuse; this keeps per-call weight casting off the hot path.
    """
    w1, b1, w2, b2, w3, b3 = params
    out_dim = w3.shape[1]
    out_pad = _round_up(out_dim, 8)
    w1c = w1.astype(compute_dtype)
    w2c = w2.astype(compute_dtype)
    w3c = jnp.pad(w3, ((0, 0), (0, out_pad - out_dim))).astype(compute_dtype)
    b3p = jnp.pad(b3, ((0, 0), (0, out_pad - out_dim)))
    return (w1c, b1, w2c, b2, w3c, b3p), out_dim


def three_layer_nn_forward(x, prepared, out_dim, *, tm=512):
    """Forward pass of the 3-layer MLP as a single batch-tiled Pallas kernel.

    `prepared` comes from prepare_params(); x is f32 [B, in_dim].
    """
    w1c, b1, w2c, b2, w3c, b3p = prepared
    B, in_dim = x.shape
    h1_dim, h2_dim = w1c.shape[1], w2c.shape[1]
    out_pad = w3c.shape[1]

    # Batch tiling: 512-row tiles at real batch sizes (amortizes ~600 cycles
    # of per-step pipeline overhead), a single 16-row-aligned tile for tiny
    # batches. Pad the batch to a tile multiple; padded rows are sliced off.
    tm = min(tm, _round_up(B, 16))
    bp = _round_up(B, tm)
    xp = x if bp == B else jnp.pad(x, ((0, bp - B), (0, 0)))

    grid = (bp // tm,)
    flops = 2 * bp * (in_dim * h1_dim + h1_dim * h2_dim + h2_dim * out_pad)
    bytes_accessed = (
        bp * in_dim * 4                                                # x (f32)
        + (in_dim * h1_dim + h1_dim * h2_dim + h2_dim * out_pad) * 2  # weights (bf16)
        + (h1_dim + h2_dim + out_pad) * 4                              # biases (f32)
        + bp * out_pad * 4                                             # output (f32)
    )

    out = pl.pallas_call(
        mlp_kernel,
        out_shape=jax.ShapeDtypeStruct((bp, out_pad), jnp.float32),
        grid_spec=pltpu.PrefetchScalarGridSpec(
            num_scalar_prefetch=0,
            grid=grid,
            in_specs=[
                pl.BlockSpec((tm, in_dim), lambda i: (i, 0)),       # x tile (f32)
                pl.BlockSpec((in_dim, h1_dim), lambda i: (0, 0)),   # w1 resident
                pl.BlockSpec((1, h1_dim), lambda i: (0, 0)),        # b1 resident
                pl.BlockSpec((h1_dim, h2_dim), lambda i: (0, 0)),   # w2 resident
                pl.BlockSpec((1, h2_dim), lambda i: (0, 0)),        # b2 resident
                pl.BlockSpec((h2_dim, out_pad), lambda i: (0, 0)),  # w3 resident
                pl.BlockSpec((1, out_pad), lambda i: (0, 0)),       # b3 resident
            ],
            out_specs=pl.BlockSpec((tm, out_pad), lambda i: (i, 0)),
        ),
        compiler_params=pltpu.CompilerParams(
            dimension_semantics=("parallel",),
        ),
        cost_estimate=pl.CostEstimate(
            flops=flops, transcendentals=0, bytes_accessed=bytes_accessed),
    )(xp, w1c, b1, w2c, b2, w3c, b3p)

    return out[:B, :out_dim]


def init_params(key, input_dim, hidden1=512, hidden2=256, output_dim=3):
    """Deterministic init mimicking PyTorch nn.Linear default (uniform ±1/sqrt(fan_in))."""
    def linear_init(k, fan_in, fan_out):
        kw, kb = jax.random.split(k)
        bound = 1.0 / jnp.sqrt(fan_in)
        # stored as [in, out] for the kernel's row-major matmul
        w = jax.random.uniform(kw, (fan_in, fan_out), jnp.float32, -bound, bound)
        b = jax.random.uniform(kb, (1, fan_out), jnp.float32, -bound, bound)
        return w, b

    k1, k2, k3 = jax.random.split(key, 3)
    w1, b1 = linear_init(k1, input_dim, hidden1)
    w2, b2 = linear_init(k2, hidden1, hidden2)
    w3, b3 = linear_init(k3, hidden2, output_dim)
    return (w1, b1, w2, b2, w3, b3)


def reference_forward(x, params, compute_dtype=jnp.bfloat16):
    """Pure-JAX reference mirroring the kernel's bf16-matmul / f32-accumulate math."""
    w1, b1, w2, b2, w3, b3 = params
    xb = x.astype(compute_dtype)
    h1 = jnp.dot(xb, w1.astype(compute_dtype),
                 preferred_element_type=jnp.float32) + b1
    h1 = jnp.maximum(h1, 0.0)
    h2 = jnp.dot(h1.astype(compute_dtype), w2.astype(compute_dtype),
                 preferred_element_type=jnp.float32) + b2
    h2 = jnp.maximum(h2, 0.0)
    return jnp.dot(h2.astype(compute_dtype), w3.astype(compute_dtype),
                   preferred_element_type=jnp.float32) + b3


if __name__ == "__main__":
    key = jax.random.PRNGKey(0)
    kx, kp = jax.random.split(key)

    batch = 8
    input_dim = 32

    x = jax.random.normal(kx, (batch, input_dim), jnp.float32)
    params = init_params(kp, input_dim, hidden1=512, hidden2=256, output_dim=3)

    # One-time param prep (bf16 weights, fc3 padded to 8 lanes) — off the hot path.
    prepared, out_dim = prepare_params(params)

    y = three_layer_nn_forward(x, prepared, out_dim)
    y = jax.block_until_ready(y)

    y_ref = reference_forward(x, params)
    assert y.shape == (batch, 3)
    assert jnp.allclose(y, y_ref, atol=1e-2, rtol=1e-2)

    print("KERNEL_OK")
</pallas_src>

<mosaic_0001>
module attributes {stable_mosaic.version = 11 : i64} {
  func.func @mlp_kernel(%arg0: i32, %arg1: memref<16x32xf32, #tpu.memory_space<vmem>>, %arg2: memref<32x512xbf16, #tpu.memory_space<vmem>>, %arg3: memref<1x512xf32, #tpu.memory_space<vmem>>, %arg4: memref<512x256xbf16, #tpu.memory_space<vmem>>, %arg5: memref<1x256xf32, #tpu.memory_space<vmem>>, %arg6: memref<256x8xbf16, #tpu.memory_space<vmem>>, %arg7: memref<1x8xf32, #tpu.memory_space<vmem>>, %arg8: memref<16x8xf32, #tpu.memory_space<vmem>>) attributes {dimension_semantics = [#tpu.dimension_semantics<parallel>], iteration_bounds = array<i64: 1>, scalar_prefetch = 0 : i64, scratch_operands = 0 : i64, tpu.core_type = #tpu.core_type<tc>, window_params = [{transform_indices = @transform_0, window_bounds = array<i64: 16, 32>}, {pipeline_mode = #tpu.pipeline_mode<synchronous>, transform_indices = @transform_1, window_bounds = array<i64: 32, 512>}, {pipeline_mode = #tpu.pipeline_mode<synchronous>, transform_indices = @transform_2, window_bounds = array<i64: 1, 512>}, {pipeline_mode = #tpu.pipeline_mode<synchronous>, transform_indices = @transform_3, window_bounds = array<i64: 512, 256>}, {pipeline_mode = #tpu.pipeline_mode<synchronous>, transform_indices = @transform_4, window_bounds = array<i64: 1, 256>}, {pipeline_mode = #tpu.pipeline_mode<synchronous>, transform_indices = @transform_5, window_bounds = array<i64: 256, 8>}, {pipeline_mode = #tpu.pipeline_mode<synchronous>, transform_indices = @transform_6, window_bounds = array<i64: 1, 8>}, {transform_indices = @transform_7, window_bounds = array<i64: 16, 8>}]} {
    %c0 = arith.constant 0 : index
    %c0_0 = arith.constant 0 : index
    %0 = vector.load %arg1[%c0, %c0_0] : memref<16x32xf32, #tpu.memory_space<vmem>>, vector<16x32xf32>
    %1 = arith.truncf %0 : vector<16x32xf32> to vector<16x32xbf16>
    %c0_1 = arith.constant 0 : index
    %c0_2 = arith.constant 0 : index
    %2 = vector.load %arg2[%c0_1, %c0_2] : memref<32x512xbf16, #tpu.memory_space<vmem>>, vector<32x512xbf16>
    %cst = arith.constant dense<0.000000e+00> : vector<16x512xf32>
    %3 = tpu.matmul %1, %2, %cst {dimension_numbers = #tpu.dot_dimension_numbers<[1], [0], [0], [1], [0, 0, 1, 1], [], []>} : vector<16x32xbf16>, vector<32x512xbf16>, vector<16x512xf32> -> vector<16x512xf32>
    %c0_3 = arith.constant 0 : index
    %c0_4 = arith.constant 0 : index
    %4 = vector.load %arg3[%c0_3, %c0_4] : memref<1x512xf32, #tpu.memory_space<vmem>>, vector<1x512xf32>
    %5 = vector.broadcast %4 : vector<1x512xf32> to vector<16x512xf32>
    %6 = arith.addf %3, %5 : vector<16x512xf32>
    %cst_5 = arith.constant 0.000000e+00 : f32
    %7 = vector.broadcast %cst_5 : f32 to vector<16x512xf32>
    %8 = arith.maximumf %6, %7 : vector<16x512xf32>
    %9 = arith.truncf %8 : vector<16x512xf32> to vector<16x512xbf16>
    %c0_6 = arith.constant 0 : index
    %c0_7 = arith.constant 0 : index
    %10 = vector.load %arg4[%c0_6, %c0_7] : memref<512x256xbf16, #tpu.memory_space<vmem>>, vector<512x256xbf16>
    %cst_8 = arith.constant dense<0.000000e+00> : vector<16x256xf32>
    %11 = tpu.matmul %9, %10, %cst_8 {dimension_numbers = #tpu.dot_dimension_numbers<[1], [0], [0], [1], [0, 0, 1, 1], [], []>} : vector<16x512xbf16>, vector<512x256xbf16>, vector<16x256xf32> -> vector<16x256xf32>
    %c0_9 = arith.constant 0 : index
    %c0_10 = arith.constant 0 : index
    %12 = vector.load %arg5[%c0_9, %c0_10] : memref<1x256xf32, #tpu.memory_space<vmem>>, vector<1x256xf32>
    %13 = vector.broadcast %12 : vector<1x256xf32> to vector<16x256xf32>
    %14 = arith.addf %11, %13 : vector<16x256xf32>
    %cst_11 = arith.constant 0.000000e+00 : f32
    %15 = vector.broadcast %cst_11 : f32 to vector<16x256xf32>
    %16 = arith.maximumf %14, %15 : vector<16x256xf32>
    %17 = arith.truncf %16 : vector<16x256xf32> to vector<16x256xbf16>
    %c0_12 = arith.constant 0 : index
    %c0_13 = arith.constant 0 : index
    %18 = vector.load %arg6[%c0_12, %c0_13] : memref<256x8xbf16, #tpu.memory_space<vmem>>, vector<256x8xbf16>
    %cst_14 = arith.constant dense<0.000000e+00> : vector<16x8xf32>
    %19 = tpu.matmul %17, %18, %cst_14 {dimension_numbers = #tpu.dot_dimension_numbers<[1], [0], [0], [1], [0, 0, 1, 1], [], []>} : vector<16x256xbf16>, vector<256x8xbf16>, vector<16x8xf32> -> vector<16x8xf32>
    %c0_15 = arith.constant 0 : index
    %c0_16 = arith.constant 0 : index
    %20 = vector.load %arg7[%c0_15, %c0_16] : memref<1x8xf32, #tpu.memory_space<vmem>>, vector<1x8xf32>
    %21 = vector.broadcast %20 : vector<1x8xf32> to vector<16x8xf32>
    %22 = arith.addf %19, %21 : vector<16x8xf32>
    %c0_17 = arith.constant 0 : index
    %c0_18 = arith.constant 0 : index
    %23 = vector.load %arg8[%c0_17, %c0_18] : memref<16x8xf32, #tpu.memory_space<vmem>>, vector<16x8xf32>
    tpu.vector_store %arg8[%c0_17, %c0_18], %22 {strides = array<i32>} : memref<16x8xf32, #tpu.memory_space<vmem>>, vector<16x8xf32>,
    return
  }
  func.func @transform_0(%arg0: i32) -> (i32, i32) {
    %c0_i32 = arith.constant 0 : i32
    %c0_i32_0 = arith.constant 0 : i32
    return %arg0, %c0_i32 : i32, i32
  }
  func.func @transform_1(%arg0: i32) -> (i32, i32) {
    %c0_i32 = arith.constant 0 : i32
    %c0_i32_0 = arith.constant 0 : i32
    %c0_i32_1 = arith.constant 0 : i32
    return %c0_i32, %c0_i32_0 : i32, i32
  }
  func.func @transform_2(%arg0: i32) -> (i32, i32) {
    %c0_i32 = arith.constant 0 : i32
    %c0_i32_0 = arith.constant 0 : i32
    %c0_i32_1 = arith.constant 0 : i32
    return %c0_i32, %c0_i32_0 : i32, i32
  }
  func.func @transform_3(%arg0: i32) -> (i32, i32) {
    %c0_i32 = arith.constant 0 : i32
    %c0_i32_0 = arith.constant 0 : i32
    %c0_i32_1 = arith.constant 0 : i32
    return %c0_i32, %c0_i32_0 : i32, i32
  }
  func.func @transform_4(%arg0: i32) -> (i32, i32) {
    %c0_i32 = arith.constant 0 : i32
    %c0_i32_0 = arith.constant 0 : i32
    %c0_i32_1 = arith.constant 0 : i32
    return %c0_i32, %c0_i32_0 : i32, i32
  }
  func.func @transform_5(%arg0: i32) -> (i32, i32) {
    %c0_i32 = arith.constant 0 : i32
    %c0_i32_0 = arith.constant 0 : i32
    %c0_i32_1 = arith.constant 0 : i32
    return %c0_i32, %c0_i32_0 : i32, i32
  }
  func.func @transform_6(%arg0: i32) -> (i32, i32) {
    %c0_i32 = arith.constant 0 : i32
    %c0_i32_0 = arith.constant 0 : i32
    %c0_i32_1 = arith.constant 0 : i32
    return %c0_i32, %c0_i32_0 : i32, i32
  }
  func.func @transform_7(%arg0: i32) -> (i32, i32) {
    %c0_i32 = arith.constant 0 : i32
    %c0_i32_0 = arith.constant 0 : i32
    return %arg0, %c0_i32 : i32, i32
  }
}

</mosaic_0001>

<bundles_post_ra>
// kernel: tpu_custom_call.1
= control target key start
LH: loop header
LB: loop body
LE: loop exit
PB: predicated region body
PF: predicated region fallthrough
CT: control target
= control target key end

     0   :  { %12 = vsyncpa [#allocation3], 0  ;;  %s1151_s24 = smov [#allocation2]   ;;  %s1307_s0 = inlined_call_operand.vmem [shape: f32[16,32], index: 0, kind: input, shape index: {}]   ;;  %s1308_s1 = inlined_call_operand.vmem [shape: bf16[32,512], index: 1, kind: input, shape index: {}]   ;;  %s1309_s2 = inlined_call_operand.vmem [shape: f32[1,512], index: 2, kind: input, shape index: {}]   ;;  %s1310_s3 = inlined_call_operand.hbm [shape: bf16[512,256], index: 3, kind: input, shape index: {}]   ;;  %s1311_s4 = inlined_call_operand.vmem [shape: f32[1,256], index: 4, kind: input, shape index: {}]   ;;  %s1312_s5 = inlined_call_operand.vmem [shape: bf16[256,8], index: 5, kind: input, shape index: {}]   ;;  %s1313_s6 = inlined_call_operand.vmem [shape: f32[1,8], index: 6, kind: input, shape index: {}]   ;;  %s1314_s7 = inlined_call_operand.vmem [shape: f32[16,8], index: 7, kind: output, shape index: {}]  }
   0x1   :  { %s24_s25 = sshll.u32 %s1151_s24, 4  ;;  %s25_s25 = int_to_ptr.vmem [resolvable:$true] %s24_s25 }
   0x2   :  { %s1137_s26 = scalar_lea.vmem %s25_s25, 8192  ;;  %p1142_p1 = scmp.lt.s32.totalorder %s25_s25, %s25_s25 }
   0x3   :  { %p1138_p0 = scmp.ne.s32.totalorder %s25_s25, %s1137_s26  ;;  %p1143_p2 = scmp.lt.s32.totalorder %s1137_s26, %s1137_s26 }
   0x5   :  { %p1144_p3 = por %p1143_p2, %p1142_p1 }
   0x7   :  { %p1145_p4 = pnand %p1144_p3, %p1138_p0 }
   0x9   :  { %1148 = shalt.err (!%p1145_p4)
}
   0xa   :  { %s1152_s27 = smov 128   ;;  %s1153_s28 = smov 8  }
   0xb   :  { %30 = dma.hbm_to_vmem [thread:$0]  %s1310_s3, 8192, %s25_s25, [#allocation3], %s1152_s27, %s1152_s27, %s1153_s28  }
   0xc   :  { %1149 = dma.done.wait [#allocation3], 8192  }
   0xd   :  { %1150 = vsyncadd [#allocation3], 4294959104  ;;  %v1154_v0 = vmov 0   ;;  %v1005_v1 = vld [vmem:[%s1308_s1 + $0x24] ss:$16 sps:$4 sm:$0xff]   ;;  %v42_v6 = vld [vmem:[%s1307_s0 + $0x8] sm:$0xff] }
   0xe   :  { %150 = vmatprep.mubr.bf16.mxu1 %v1154_v0  ;;  %v1007_v2 = vld [vmem:[%s1308_s1 + $0x20] ss:$16 sps:$4 sm:$0xff]   ;;  %130 = vmatprep.subr.bf16.mxu1 %v1005_v1  ;;  %v1008_v3 = vld [vmem:[%s1308_s1 + $0x4] ss:$16 sps:$4 sm:$0xff]   ;;  %v1013_v7 = vld [vmem:[%s1308_s1 + $0x2c] ss:$16 sps:$4 sm:$0xff]  }
   0xf   :  { %v1010_v4 = vld [vmem:[%s1308_s1] ss:$16 sps:$4 sm:$0xff]   ;;  %131 = vmatpush1.bf16.msra.mxu1 %v1007_v2  ;;  %v1011_v8 = vld [vmem:[%s1308_s1 + $0x28] ss:$16 sps:$4 sm:$0xff]   ;;  %v1017_v10 = vld [vmem:[#allocation2 + $0x74] ss:$8 sps:$4 sm:$0xff]  }
  0x10   :  { %v41_v5 = vld [vmem:[%s1307_s0] sm:$0xff]  ;;  %132 = vmatprep.subr.bf16.mxu1 %v1008_v3  ;;  %vm114_vm0 = vcmask 261120   ;;  %v1019_v11 = vld [vmem:[#allocation2 + $0x70] ss:$8 sps:$4 sm:$0xff]   ;;  %v1016_v12 = vld [vmem:[%s1308_s1 + $0xc] ss:$16 sps:$4 sm:$0xff]   ;;  %612 = vmatprep.subr.bf16.mxu0 %v1017_v10 }
  0x11   :  { %v43_v9 = vpack.c.bf16 %v42_v6, %v41_v5  ;;  %v1020_v13 = vld [vmem:[#allocation2 + $0x64] ss:$8 sps:$4 sm:$0xff]   ;;  %613 = vmatpush1.bf16.msra.mxu0 %v1019_v11  ;;  %v1022_v14 = vld [vmem:[#allocation2 + $0x60] ss:$8 sps:$4 sm:$0xff]   ;;  %v1023_v15 = vld [vmem:[#allocation2 + $0x54] ss:$8 sps:$4 sm:$0xff]  }
  0x12   :  { %614 = vmatprep.subr.bf16.mxu0 %v1020_v13  ;;  %v1014_v16 = vld [vmem:[%s1308_s1 + $0x8] ss:$16 sps:$4 sm:$0xff]   ;;  %v1027_v17 = vld [vmem:[#allocation2 + $0x174] ss:$8 sps:$4 sm:$0xff]   ;;  %v1029_v19 = vld [vmem:[#allocation2 + $0x44] ss:$8 sps:$4 sm:$0xff]   ;;  %v54_v13 = vlaneseq }
  0x13   :  { %133 = vmatpush1.bf16.msra.mxu1 %v1010_v4  ;;  %v1028_v18 = vld [vmem:[#allocation2 + $0x50] ss:$8 sps:$4 sm:$0xff]   ;;  %v1033_v21 = vld [vmem:[#allocation2 + $0x164] ss:$8 sps:$4 sm:$0xff]   ;;  %v1034_v22 = vld [vmem:[#allocation2 + $0x40] ss:$8 sps:$4 sm:$0xff]  }
  0x14   :  { %173 = vmatprep.subr.bf16.mxu1 %v1013_v7  ;;  %v1025_v20 = vld [vmem:[#allocation2 + $0x170] ss:$8 sps:$4 sm:$0xff]   ;;  %v1035_v23 = vld [vmem:[#allocation2 + $0x34] ss:$8 sps:$4 sm:$0xff]   ;;  %v1031_v24 = vld [vmem:[#allocation2 + $0x160] ss:$8 sps:$4 sm:$0xff]  }
  0x15   :  { %615 = vmatpush1.bf16.msra.mxu0 %v1022_v14  ;;  %v1039_v25 = vld [vmem:[#allocation2 + $0x154] ss:$8 sps:$4 sm:$0xff]   ;;  %v1040_v26 = vld [vmem:[#allocation2 + $0x30] ss:$8 sps:$4 sm:$0xff]   ;;  %v1041_v27 = vld [vmem:[#allocation2 + $0x24] ss:$8 sps:$4 sm:$0xff]  }
  0x16   :  { %896 = vmatmul.mubr.msk.bf16.vlgmr.msra.gmra.mxu1 %vm114_vm0, %v43_v9  ;;  %616 = vmatprep.subr.bf16.mxu0 %v1023_v15  ;;  %v1037_v28 = vld [vmem:[#allocation2 + $0x150] ss:$8 sps:$4 sm:$0xff]   ;;  %v1045_v29 = vld [vmem:[#allocation2 + $0x144] ss:$8 sps:$4 sm:$0xff]   ;;  %v1046_v30 = vld [vmem:[#allocation2 + $0x20] ss:$8 sps:$4 sm:$0xff]  }
  0x17   :  { %174 = vmatpush1.bf16.msra.mxu1 %v1011_v8  ;;  %193 = vmatprep.mubr.bf16.mxu1 %v1154_v0  ;;  %v1047_v31 = vld [vmem:[#allocation2 + $0x14] ss:$8 sps:$4 sm:$0xff]   ;;  %v1043_v32 = vld [vmem:[#allocation2 + $0x140] ss:$8 sps:$4 sm:$0xff]   ;;  %v1052_v34 = vld [vmem:[#allocation2 + $0x10] ss:$8 sps:$4 sm:$0xff]  }
  0x18   :  { %175 = vmatprep.subr.bf16.mxu1 %v1016_v12  ;;  %v1051_v33 = vld [vmem:[#allocation2 + $0x134] ss:$8 sps:$4 sm:$0xff]   ;;  %v1053_v35 = vld [vmem:[#allocation2 + $0x4] ss:$8 sps:$4 sm:$0xff]   ;;  %v1049_v36 = vld [vmem:[#allocation2 + $0x130] ss:$8 sps:$4 sm:$0xff]  }
  0x19   :  { %617 = vmatpush1.bf16.msra.mxu0 %v1028_v18  ;;  %v1057_v37 = vld [vmem:[#allocation2 + $0x124] ss:$8 sps:$4 sm:$0xff]   ;;  %v1058_v38 = vld [vmem:[#allocation2] ss:$8 sps:$4 sm:$0xff]   ;;  %v1059_v39 = vld [vmem:[#allocation2 + $0xf4] ss:$8 sps:$4 sm:$0xff]  }
  0x1a   :  { %618 = vmatprep.subr.bf16.mxu0 %v1029_v19  ;;  %v1055_v40 = vld [vmem:[#allocation2 + $0x120] ss:$8 sps:$4 sm:$0xff]   ;;  %v1063_v41 = vld [vmem:[#allocation2 + $0x114] ss:$8 sps:$4 sm:$0xff]   ;;  %v1061_v42 = vld [vmem:[#allocation2 + $0x110] ss:$8 sps:$4 sm:$0xff]  }
  0x1b   :  { %176 = vmatpush1.bf16.msra.mxu1 %v1014_v16  ;;  %v1064_v43 = vld [vmem:[#allocation2 + $0xf0] ss:$8 sps:$4 sm:$0xff]   ;;  %v1065_v44 = vld [vmem:[#allocation2 + $0xe4] ss:$8 sps:$4 sm:$0xff]   ;;  %v1070_v46 = vld [vmem:[#allocation2 + $0xe0] ss:$8 sps:$4 sm:$0xff]  }
  0x1c   :  { %655 = vmatprep.subr.bf16.mxu1 %v1027_v17  ;;  %v1069_v45 = vld [vmem:[#allocation2 + $0x104] ss:$8 sps:$4 sm:$0xff]   ;;  %v1071_v47 = vld [vmem:[#allocation2 + $0xd4] ss:$8 sps:$4 sm:$0xff]   ;;  %v1067_v48 = vld [vmem:[#allocation2 + $0x100] ss:$8 sps:$4 sm:$0xff]  }
  0x1d   :  { %619 = vmatpush1.bf16.msra.mxu0 %v1034_v22  ;;  %v1075_v49 = vld [vmem:[#allocation2 + $0x1f4] ss:$8 sps:$4 sm:$0xff]   ;;  %v1076_v50 = vld [vmem:[#allocation2 + $0xd0] ss:$8 sps:$4 sm:$0xff]   ;;  %v1077_v51 = vld [vmem:[#allocation2 + $0xc4] ss:$8 sps:$4 sm:$0xff]  }
  0x1e   :  { %897 = vmatmul.mubr.msk.bf16.vlgmr.msra.gmra.mxu1 %vm114_vm0, %v43_v9  ;;  %620 = vmatprep.subr.bf16.mxu0 %v1035_v23  ;;  %v1073_v52 = vld [vmem:[#allocation2 + $0x1f0] ss:$8 sps:$4 sm:$0xff]   ;;  %v1081_v53 = vld [vmem:[#allocation2 + $0x1e4] ss:$8 sps:$4 sm:$0xff]   ;;  %v1082_v54 = vld [vmem:[#allocation2 + $0xc0] ss:$8 sps:$4 sm:$0xff]  }
  0x1f   :  { %656 = vmatpush1.bf16.msra.mxu1 %v1025_v20  ;;  %v1083_v55 = vld [vmem:[#allocation2 + $0xb4] ss:$8 sps:$4 sm:$0xff]   ;;  %v1079_v56 = vld [vmem:[#allocation2 + $0x1e0] ss:$8 sps:$4 sm:$0xff]   ;;  %v1088_v58 = vld [vmem:[#allocation2 + $0xb0] ss:$8 sps:$4 sm:$0xff]  }
  0x20   :  { %657 = vmatprep.subr.bf16.mxu1 %v1033_v21  ;;  %v1087_v57 = vld [vmem:[#allocation2 + $0x1d4] ss:$8 sps:$4 sm:$0xff]   ;;  %v1085_v59 = vld [vmem:[#allocation2 + $0x1d0] ss:$8 sps:$4 sm:$0xff]   ;;  %v1089_v60 = vld [vmem:[#allocation2 + $0xa4] ss:$8 sps:$4 sm:$0xff]  }
  0x21   :  { %621 = vmatpush1.bf16.msra.mxu0 %v1040_v26  ;;  %v1093_v61 = vld [vmem:[#allocation2 + $0x1c4] ss:$8 sps:$4 sm:$0xff]   ;;  %v1091_v62 = vld [vmem:[#allocation2 + $0x1c0] ss:$8 sps:$4 sm:$0xff]   ;;  %v1095_v0 = vld [vmem:[#allocation2 + $0x94] ss:$8 sps:$4 sm:$0xff]  }
  0x22   :  { %622 = vmatprep.subr.bf16.mxu0 %v1041_v27  ;;  %v1094_v63 = vld [vmem:[#allocation2 + $0xa0] ss:$8 sps:$4 sm:$0xff]   ;;  %v1099_v1 = vld [vmem:[#allocation2 + $0x1b4] ss:$8 sps:$4 sm:$0xff]   ;;  %v1097_v2 = vld [vmem:[#allocation2 + $0x1b0] ss:$8 sps:$4 sm:$0xff]  }
  0x23   :  { %658 = vmatpush1.bf16.msra.mxu1 %v1031_v24  ;;  %v1100_v3 = vld [vmem:[#allocation2 + $0x90] ss:$8 sps:$4 sm:$0xff]   ;;  %v1101_v4 = vld [vmem:[#allocation2 + $0x84] ss:$8 sps:$4 sm:$0xff]   ;;  %v1103_v6 = vld [vmem:[#allocation2 + $0x1a0] ss:$8 sps:$4 sm:$0xff]  }
  0x24   :  { %659 = vmatprep.subr.bf16.mxu1 %v1039_v25  ;;  %v1105_v5 = vld [vmem:[#allocation2 + $0x1a4] ss:$8 sps:$4 sm:$0xff]   ;;  %v1106_v7 = vld [vmem:[#allocation2 + $0x80] ss:$8 sps:$4 sm:$0xff]   ;;  %v1109_v8 = vld [vmem:[#allocation2 + $0x194] ss:$8 sps:$4 sm:$0xff]  }
  0x25   :  { %623 = vmatpush1.bf16.msra.mxu0 %v1046_v30  ;;  %v1107_v9 = vld [vmem:[#allocation2 + $0x190] ss:$8 sps:$4 sm:$0xff]   ;;  %v1112_v10 = vld [vmem:[#allocation2 + $0x184] ss:$8 sps:$4 sm:$0xff]   ;;  %v1110_v11 = vld [vmem:[#allocation2 + $0x180] ss:$8 sps:$4 sm:$0xff]  }
  0x26   :  { %624 = vmatprep.subr.bf16.mxu0 %v1047_v31  ;;  %v1113_v12 = vld [vmem:[%s1312_s5 + $0x78] sm:$0xff]   ;;  %v1233_v14 = vshrl.u32 %v54_v13, 7  ;;  %v52_v17 = vld [vmem:[%s1309_s2] sm:$0xf]  ;;  %vm880_vm1 = vcmask 64512  }
  0x27   :  { %660 = vmatpush1.bf16.msra.mxu1 %v1037_v28 }
  0x28   :  { %661 = vmatprep.subr.bf16.mxu1 %v1045_v29  ;;  %v60_v15 = vsub.s32 1, %v1233_v14  ;;  %v56_v16 = vsub.s32 0, %v1233_v14  ;;  %v68_v25 = vsub.s32 3, %v1233_v14  ;;  %v64_v28 = vsub.s32 2, %v1233_v14 }
  0x29   :  { %625 = vmatpush1.bf16.msra.mxu0 %v1052_v34 }
  0x2a   :  { %626 = vmatprep.subr.bf16.mxu0 %v1053_v35  ;;  %v61_v19 = vrot.slane %v52_v17, %v60_v15  ;;  %v57_v20 = vrot.slane %v52_v17, %v56_v16  ;;  %v69_v34 = vrot.slane %v52_v17, %v68_v25 }
  0x2b   :  { %662 = vmatpush1.bf16.msra.mxu1 %v1043_v32 }
  0x2c   :  { %663 = vmatprep.subr.bf16.mxu1 %v1051_v33 }
  0x2d   :  { %627 = vmatpush1.bf16.msra.mxu0 %v1058_v38 }
  0x2e   :  { %628 = vmatprep.subr.bf16.mxu0 %v1059_v39  ;;  %v1114_v39 = vld [vmem:[%s1312_s5 + $0x38] sm:$0xff]  }
  0x2f   :  { %664 = vmatpush1.bf16.msra.mxu1 %v1049_v36  ;;  %v65_v36 = vrot.slane %v52_v17, %v64_v28 }
  0x30   :  { %665 = vmatprep.subr.bf16.mxu1 %v1057_v37 }
  0x31   :  { %629 = vmatpush2.bf16.msra.mxu0 %v1064_v43 }
  0x32   :  { %630 = vmatprep.subr.bf16.mxu0 %v1065_v44 }
  0x33   :  { %666 = vmatpush1.bf16.msra.mxu1 %v1055_v40 }
  0x34   :  { %667 = vmatprep.subr.bf16.mxu1 %v1063_v41 }
  0x35   :  { %631 = vmatpush2.bf16.msra.mxu0 %v1070_v46 }
  0x36   :  { %632 = vmatprep.subr.bf16.mxu0 %v1071_v47 }
  0x37   :  { %668 = vmatpush1.bf16.msra.mxu1 %v1061_v42  ;;  %v1115_v42 = vld [vmem:[%s1312_s5 + $0x70] sm:$0xff]  }
  0x38   :  { %669 = vmatprep.subr.bf16.mxu1 %v1069_v45 }
  0x39   :  { %633 = vmatpush2.bf16.msra.mxu0 %v1076_v50  ;;  %v1117_v50 = vld [vmem:[%s1312_s5 + $0x68] sm:$0xff]  }
  0x3a   :  { %634 = vmatprep.subr.bf16.mxu0 %v1077_v51 }
  0x3b   :  { %670 = vmatpush1.bf16.msra.mxu1 %v1067_v48  ;;  %v1116_v48 = vld [vmem:[%s1312_s5 + $0x30] sm:$0xff]  }
  0x3c   :  { %671 = vmatprep.subr.bf16.mxu1 %v1075_v49 }
  0x3d   :  { %635 = vmatpush2.bf16.msra.mxu0 %v1082_v54 }
  0x3e   :  { %636 = vmatprep.subr.bf16.mxu0 %v1083_v55  ;;  %v1118_v55 = vld [vmem:[%s1312_s5 + $0x28] sm:$0xff]  }
  0x3f   :  { %672 = vmatpush2.bf16.msra.mxu1 %v1073_v52 }
  0x40   :  { %673 = vmatprep.subr.bf16.mxu1 %v1081_v53 }
  0x41   :  { %637 = vmatpush2.bf16.msra.mxu0 %v1088_v58  ;;  %v1120_v58 = vld [vmem:[%s1312_s5 + $0x20] sm:$0xff]  }
  0x42   :  { %638 = vmatprep.subr.bf16.mxu0 %v1089_v60  ;;  %v1122_v60 = vld [vmem:[%s1312_s5 + $0x18] sm:$0xff]  }
  0x43   :  { %674 = vmatpush2.bf16.msra.mxu1 %v1079_v56 }
  0x44   :  { %675 = vmatprep.subr.bf16.mxu1 %v1087_v57  ;;  %v1119_v57 = vld [vmem:[%s1312_s5 + $0x60] sm:$0xff]  }
  0x45   :  { %639 = vmatpush2.bf16.msra.mxu0 %v1094_v63  ;;  %v1125_v63 = vld [vmem:[%s1312_s5 + $0x48] sm:$0xff]  }
  0x46   :  { %640 = vmatprep.subr.bf16.mxu0 %v1095_v0  ;;  %v1126_v0 = vld [vmem:[%s1312_s5 + $0x8] sm:$0xff]  }
  0x47   :  { %676 = vmatpush2.bf16.msra.mxu1 %v1085_v59  ;;  %v1121_v59 = vld [vmem:[%s1312_s5 + $0x58] sm:$0xff]  }
  0x48   :  { %677 = vmatprep.subr.bf16.mxu1 %v1093_v61  ;;  %v1123_v61 = vld [vmem:[%s1312_s5 + $0x50] sm:$0xff]  }
  0x49   :  { %641 = vmatpush2.bf16.msra.mxu0 %v1100_v3 }
  0x4a   :  { %642 = vmatprep.subr.bf16.mxu0 %v1101_v4 }
  0x4b   :  { %678 = vmatpush2.bf16.msra.mxu1 %v1091_v62  ;;  %v1124_v62 = vld [vmem:[%s1312_s5 + $0x10] sm:$0xff]  }
  0x4c   :  { %679 = vmatprep.subr.bf16.mxu1 %v1099_v1  ;;  %v1127_v1 = vld [vmem:[%s1312_s5 + $0x40] sm:$0xff]  }
  0x4d   :  { %643 = vmatpush2.bf16.msra.mxu0 %v1106_v7 }
  0x4e   :  { %979 = vmatprep.subr.bf16.mxu0 %v1113_v12 }
  0x4f   :  { %680 = vmatpush2.bf16.msra.mxu1 %v1097_v2  ;;  %v1128_v2 = vld [vmem:[%s1312_s5] sm:$0xff]  }
  0x50   :  { %681 = vmatprep.subr.bf16.mxu1 %v1105_v5  ;;  %v280_v5 = vld [vmem:[%s1311_s4] sm:$0x3] }
  0x51   :  { %v289_v7 = vrot.slane %v280_v5, %v60_v15 }
  0x53   :  { %682 = vmatpush2.bf16.msra.mxu1 %v1103_v6 }
  0x54   :  { %683 = vmatprep.subr.bf16.mxu1 %v1109_v8  ;;  %v285_v8 = vrot.slane %v280_v5, %v56_v16 }
  0x57   :  { %684 = vmatpush2.bf16.msra.mxu1 %v1107_v9 }
  0x58   :  { %685 = vmatprep.subr.bf16.mxu1 %v1112_v10 }
  0x5b   :  { %686 = vmatpush2.bf16.msra.mxu1 %v1110_v11 }
  0xd6   :  { %v152_v18 = vpop.f32.mrf.mxu1 }
  0xd7   :  { %v153_v26 = vadd.f32 %v152_v18, %v57_v20 }
  0xd8   :  { %v154_v21 = vpop.f32.mrf.mxu1 }
  0xd9   :  { %v155_v23 = vadd.f32 %v154_v21, %v61_v19  ;;  %v204_v35 = vmax.f32 %v153_v26, 0.0 }
  0xda   :  { %v156_v22 = vpop.f32.mrf.mxu1 }
  0xdb   :  { %v157_v24 = vadd.f32 %v156_v22, %v57_v20  ;;  %v205_v32 = vmax.f32 %v155_v23, 0.0 }
  0xdc   :  { %v158_v27 = vpop.f32.mrf.mxu1 }
  0xdd   :  { %v159_v29 = vadd.f32 %v158_v27, %v61_v19  ;;  %v208_v30 = vmax.f32 %v157_v24, 0.0 }
  0xde   :  { %v195_v31 = vpop.f32.mrf.mxu1 }
  0xdf   :  { %v209_v33 = vmax.f32 %v159_v29, 0.0  ;;  %v212_v40 = vpack.c.bf16 %v208_v30, %v204_v35  ;;  %v196_v45 = vadd.f32 %v195_v31, %v65_v36  ;;  %v962_v29 = vld [vmem:[%s1313_s6] ss:$0 sm:$0xff] }
  0xe0   :  { %v197_v37 = vpop.f32.mrf.mxu1 }
  0xe1   :  { %v213_v38 = vpack.c.bf16 %v209_v33, %v205_v32  ;;  %v198_v43 = vadd.f32 %v197_v37, %v69_v34  ;;  %v206_v53 = vmax.f32 %v196_v45, 0.0 }
  0xe2   :  { %v199_v41 = vpop.f32.mrf.mxu1 }
  0xe3   :  { %v200_v44 = vadd.f32 %v199_v41, %v65_v36  ;;  %644 = vmatprep.mubr.bf16.mxu0 %v213_v38  ;;  %v207_v51 = vmax.f32 %v198_v43, 0.0 }
  0xe4   :  { %v201_v46 = vpop.f32.mrf.mxu1  ;;  %645 = vmatmul.mubr.bf16.vlgmr.msra.gmra.mxu0 %v212_v40 }
  0xe5   :  { %v202_v47 = vadd.f32 %v201_v46, %v69_v34  ;;  %980 = vmatpush3.bf16.msra.mxu0 %v1114_v39  ;;  %v210_v49 = vmax.f32 %v200_v44, 0.0 }
  0xe6   :  { %981 = vmatprep.subr.bf16.mxu0 %v1115_v42 }
  0xe7   :  { %v211_v52 = vmax.f32 %v202_v47, 0.0  ;;  %v214_v56 = vpack.c.bf16 %v210_v49, %v206_v53 }
  0xe9   :  { %v215_v54 = vpack.c.bf16 %v211_v52, %v207_v51  ;;  %982 = vmatpush3.bf16.msra.mxu0 %v1116_v48 }
  0xea   :  { %983 = vmatprep.subr.bf16.mxu0 %v1117_v50 }
  0xeb   :  { %687 = vmatprep.mubr.bf16.mxu1 %v215_v54 }
  0xec   :  { %688 = vmatmul.mubr.bf16.vlgmr.msra.gmra.mxu1 %v214_v56 }
  0xed   :  { %984 = vmatpush3.bf16.msra.mxu0 %v1118_v55 }
  0xee   :  { %985 = vmatprep.subr.bf16.mxu0 %v1119_v57 }
  0xf1   :  { %986 = vmatpush3.bf16.msra.mxu0 %v1120_v58 }
  0xf2   :  { %987 = vmatprep.subr.bf16.mxu0 %v1121_v59 }
  0xf5   :  { %988 = vmatpush3.bf16.msra.mxu0 %v1122_v60 }
  0xf6   :  { %989 = vmatprep.subr.bf16.mxu0 %v1123_v61 }
  0xf9   :  { %990 = vmatpush3.bf16.msra.mxu0 %v1124_v62 }
  0xfa   :  { %991 = vmatprep.subr.bf16.mxu0 %v1125_v63 }
  0xfd   :  { %992 = vmatpush3.bf16.msra.mxu0 %v1126_v0 }
  0xfe   :  { %993 = vmatprep.subr.bf16.mxu0 %v1127_v1 }
 0x101   :  { %994 = vmatpush3.bf16.msra.mxu0 %v1128_v2 }
 0x1a4   :  { %v646_v3 = vpop.f32.mrf.mxu0 }
 0x1a5   :  { %v647_v17 = vadd.f32 %v646_v3, %v285_v8 }
 0x1a6   :  { %v648_v4 = vpop.f32.mrf.mxu0 }
 0x1a7   :  { %v649_v12 = vadd.f32 %v648_v4, %v289_v7 }
 0x1a8   :  { %v650_v6 = vpop.f32.mrf.mxu0 }
 0x1a9   :  { %v651_v13 = vadd.f32 %v650_v6, %v285_v8 }
 0x1aa   :  { %v652_v10 = vpop.f32.mrf.mxu0 }
 0x1ab   :  { %v653_v19 = vadd.f32 %v652_v10, %v289_v7 }
 0x1ac   :  { %v689_v9 = vpop.f32.mrf.mxu1 }
 0x1ad   :  { %v690_v22 = vadd.f32 %v689_v9, %v647_v17 }
 0x1ae   :  { %v691_v11 = vpop.f32.mrf.mxu1 }
 0x1af   :  { %v692_v20 = vadd.f32 %v691_v11, %v649_v12  ;;  %v698_v15 = vmax.f32 %v690_v22, 0.0 }
 0x1b0   :  { %v693_v18 = vpop.f32.mrf.mxu1 }
 0x1b1   :  { %v694_v21 = vadd.f32 %v693_v18, %v651_v13  ;;  %v699_v26 = vmax.f32 %v692_v20, 0.0 }
 0x1b2   :  { %v695_v23 = vpop.f32.mrf.mxu1 }
 0x1b3   :  { %v696_v24 = vadd.f32 %v695_v23, %v653_v19  ;;  %v700_v25 = vmax.f32 %v694_v21, 0.0 }
 0x1b5   :  { %v701_v27 = vmax.f32 %v696_v24, 0.0  ;;  %v702_v14 = vpack.c.bf16 %v700_v25, %v698_v15 }
 0x1b7   :  { %v703_v28 = vpack.c.bf16 %v701_v27, %v699_v26 }
 0x1b9   :  { %871 = vmatprep.mubr.bf16.mxu0 %v703_v28 }
 0x1ba   :  { %872 = vmatmul.mubr.bf16.vlgmr.msra.gmra.mxu0 %v702_v14 }
 0x27a   :  { %v995_v16 = vpop.f32.mrf.mxu0 }
 0x27c   :  { %v996_v30 = vpop.f32.mrf.mxu0 }
 0x27d   :  { %v997_v31 = vadd.f32 %v996_v30, %v995_v16 }
 0x27e   :  { %v998_v32 = vpop.f32.mrf.mxu0 }
 0x27f   :  { %v874_v33 = vadd.f32 %v997_v31, %v962_v29 }
 0x280   :  { %v999_v34 = vpop.f32.mrf.mxu0 }
 0x281   :  { %881 = vst.msk [vmem:[%s1314_s7] sm:$0xff] %vm880_vm1, %v874_v33  ;;  %v1000_v35 = vadd.f32 %v999_v34, %v998_v32 }
 0x283   :  { %v877_v36 = vadd.f32 %v1000_v35, %v962_v29 }
 0x285   :  { %882 = vst.msk [vmem:[%s1314_s7 + $0x8] sm:$0xff] %vm880_vm1, %v877_v36 }
 0x286   :  { %887 = vsyncpa [#allocation3], 1 }

</bundles_post_ra>
